<compile_context>
chip_gen: v7x
topology: tpu7x:2x2x1
jax: 0.10.0
libtpu: 0.0.40
codegen_flags: <defaults>
</compile_context>

<pallas_src>
import functools

import jax
import jax.numpy as jnp
from jax.experimental import pallas as pl
from jax.experimental.pallas import tpu as pltpu


def _round_up(x, m):
    return (x + m - 1) // m * m


def _vmem_capacity_bytes():
    try:
        return int(pltpu.get_tpu_info().vmem_capacity_bytes)
    except Exception:
        return 64 * 1024 * 1024  # conservative fallback (v7x per-TC VMEM)


def _head_kernel(x_ref, w_ref, y_ref):
    # One MXU matmul per pre-tiled weight slab; f32 accumulation.
    # Linear biases are already folded into the last used weight row (x carries
    # a constant-1 column), so there is no separate bias stream or add.
    y_ref[...] = jnp.dot(
        x_ref[...], w_ref[...], preferred_element_type=jnp.float32
    ).astype(y_ref.dtype)


def prepare_head_params(W1_w, W1_b, b1_w, b1_b, *, param_dtype=jnp.bfloat16,
                        tn=None, max_batch=8):
    """One-time parameter repacking (do NOT call per forward step).

    torch layout:  W1_w (Din*Dout, H), W1_b (Din*Dout,), b1_w (Dout, H), b1_b (Dout,)
    packed layout: w_tiled (num_tiles, Hp, tn)  -- contiguous per tile,
      rows 0..H-1  : [W1_w^T | b1_w^T]   (each head lane-padded to 128)
      row  H       : [W1_b   | b1_b  ]   (biases folded into the matmul)
      rows H+1..Hp : zeros (sublane padding for the param dtype)
    """
    D1, H = W1_w.shape
    D2, H2 = b1_w.shape
    assert H2 == H
    D1p = _round_up(D1, 128)
    D2p = _round_up(D2, 128)
    N = D1p + D2p

    w_item = jnp.dtype(param_dtype).itemsize
    sub = 8 * (4 // w_item)                 # sublane packing: 8 for f32, 16 for bf16
    Hp = _round_up(H + 1, sub)              # +1 row for the folded biases
    Bp = _round_up(max(int(max_batch), 1), 8)

    # VMEM-derived tile width for the streamed (fused) N axis.
    if tn is None:
        budget = int(0.5 * _vmem_capacity_bytes())
        per_col = 2 * (Hp * w_item + Bp * 4)      # dbl-buffered weight + f32 out cols
        resident = 2 * Bp * Hp * w_item           # (dbl-buffered) resident x
        tn = max(128, max(0, budget - resident) // per_col // 128 * 128)
    tn = max(128, _round_up(int(tn), 128))
    if N > 128:
        # Keep >=2 tiles alive so both v7x TensorCores stream weights
        # (the tiled axis is marked "parallel"); costs nothing on v5e/v6e.
        tn = min(tn, _round_up(pl.cdiv(N, 2), 128))
    tn = min(tn, _round_up(N, 128))
    num_tiles = pl.cdiv(N, tn)
    Np = num_tiles * tn                      # padded ONCE here, never per forward

    w_full = jnp.zeros((Hp, Np), jnp.float32)
    w_full = w_full.at[:H, :D1].set(W1_w.T.astype(jnp.float32))
    w_full = w_full.at[:H, D1p:D1p + D2].set(b1_w.T.astype(jnp.float32))
    w_full = w_full.at[H, :D1].set(W1_b.astype(jnp.float32))
    w_full = w_full.at[H, D1p:D1p + D2].set(b1_b.astype(jnp.float32))
    w_full = w_full.astype(param_dtype)

    # Pre-tile: (num_tiles, Hp, tn) -> one dense, contiguous DMA per grid step.
    w_tiled = jnp.transpose(w_full.reshape(Hp, num_tiles, tn), (1, 0, 2))

    meta = dict(H=H, Hp=Hp, D1=D1, D2=D2, D1p=D1p, D2p=D2p, N=N, Np=Np,
                tn=tn, num_tiles=num_tiles)
    return w_tiled, meta


@functools.partial(jax.jit, static_argnames=("output_dim_in", "output_dim_out"))
def head_forward(x, w_tiled, output_dim_in, output_dim_out):
    """x: (B, H).  w_tiled from prepare_head_params().

    Returns (w, b) with w: (B, Dout, Din), b: (B, Dout, 1) — matches the
    PyTorch module's forward (W1(x).view / b1(x).view).
    """
    B, H = x.shape
    num_tiles, Hp, tn = w_tiled.shape
    Np = num_tiles * tn
    D1 = output_dim_in * output_dim_out
    D2 = output_dim_out
    D1p = _round_up(D1, 128)
    D2p = _round_up(D2, 128)
    assert Hp >= H + 1, (Hp, H)
    assert Np >= D1p + D2p, (Np, D1p + D2p)

    w_dtype = w_tiled.dtype
    out_dtype = x.dtype
    w_item = jnp.dtype(w_dtype).itemsize
    out_item = jnp.dtype(out_dtype).itemsize

    # Sublane-pad the batch, append the constant-1 bias column (lane H) and the
    # zero padding columns in one shot, then cast to the weight dtype so the
    # MXU runs its native low-precision path.
    Bp = _round_up(max(B, 1), 8)
    x_aug = jnp.zeros((Bp, Hp), jnp.float32)
    x_aug = x_aug.at[:B, :H].set(x.astype(jnp.float32))
    x_aug = x_aug.at[:B, H].set(1.0)
    x_aug = x_aug.astype(w_dtype)

    # Dtype-aware VMEM accounting (double-buffered weight/output streams +
    # resident x) and a generation-aware limit.
    vmem_needed = (2 * (Hp * tn * w_item + Bp * tn * out_item)
                   + 2 * Bp * Hp * w_item)
    vmem_cap = _vmem_capacity_bytes()
    vmem_limit = int(min(int(0.9 * vmem_cap),
                         max(2 * vmem_needed, 32 * 1024 * 1024)))

    cost = pl.CostEstimate(
        flops=2 * Bp * Hp * Np,
        transcendentals=0,
        bytes_accessed=(Bp * Hp * w_item          # x (read once)
                        + Np * Hp * w_item        # streamed weight
                        + Bp * Np * out_item),    # output writeback
    )

    y = pl.pallas_call(
        _head_kernel,
        out_shape=jax.ShapeDtypeStruct((Bp, Np), out_dtype),
        grid=(num_tiles,),
        in_specs=[
            # x is resident across tiles (constant index_map -> fetched once).
            pl.BlockSpec((Bp, Hp), lambda i: (0, 0)),
            # One contiguous pre-tiled weight slab per grid step; leading axis
            # squeezed so the kernel sees (Hp, tn).
            pl.BlockSpec((None, Hp, tn), lambda i: (i, 0, 0)),
        ],
        out_specs=pl.BlockSpec((Bp, tn), lambda i: (0, i)),
        compiler_params=pltpu.CompilerParams(
            dimension_semantics=("parallel",),   # independent N tiles (v7x megacore)
            vmem_limit_bytes=vmem_limit,
        ),
        cost_estimate=cost,
    )(x_aug, w_tiled)

    yw = y[:B, :D1]                  # weight-head output (lane-padded slice)
    yb = y[:B, D1p:D1p + D2]         # bias-head output
    w = yw.reshape(B, output_dim_out, output_dim_in)
    b = yb.reshape(B, output_dim_out, 1)
    return w, b


if __name__ == "__main__":
    # Small shapes consistent with the module.
    batch = 2
    latent_dim = 32
    output_dim_in = 16
    output_dim_out = 8
    stddev = 0.05

    key = jax.random.PRNGKey(0)
    kx, kw1, kb1 = jax.random.split(key, 3)

    # Deterministic parameter init mirroring init_layers():
    #   uniform(-stddev, stddev) for weights, zeros for biases.
    W1_w = jax.random.uniform(
        kw1, (output_dim_in * output_dim_out, latent_dim),
        dtype=jnp.float32, minval=-stddev, maxval=stddev)
    W1_b = jnp.zeros((output_dim_in * output_dim_out,), dtype=jnp.float32)
    b1_w = jax.random.uniform(
        kb1, (output_dim_out, latent_dim),
        dtype=jnp.float32, minval=-stddev, maxval=stddev)
    b1_b = jnp.zeros((output_dim_out,), dtype=jnp.float32)

    x = jax.random.normal(kx, (batch, latent_dim), dtype=jnp.float32)

    # One-time packing (transpose + fuse + bias-fold + pad + pre-tile, bf16).
    # NOT repeated per forward.  Auto tn: VMEM-budgeted, capped so >=2 tiles
    # stay alive (here N=256 -> tn=128, grid=(2,) exercises the tiled path).
    w_tiled, meta = prepare_head_params(W1_w, W1_b, b1_w, b1_b)
    w_tiled = jax.block_until_ready(w_tiled)

    w, b = head_forward(x, w_tiled, output_dim_in, output_dim_out)
    jax.block_until_ready((w, b))

    # Reference check in plain JAX (same math as torch.nn.Linear).  Weights are
    # streamed as bf16, so compare at roughly bf16 precision.
    w_ref = (x @ W1_w.T + W1_b).reshape(batch, output_dim_out, output_dim_in)
    b_ref = (x @ b1_w.T + b1_b).reshape(batch, output_dim_out, 1)
    assert jnp.allclose(w, w_ref, atol=2e-2), "w mismatch"
    assert jnp.allclose(b, b_ref, atol=2e-2), "b mismatch"

    print("KERNEL_OK")
</pallas_src>

<mosaic_0001>
module attributes {stable_mosaic.version = 11 : i64} {
  func.func @_head_kernel(%arg0: i32, %arg1: memref<8x48xbf16, #tpu.memory_space<vmem>>, %arg2: memref<1x48x128xbf16, #tpu.memory_space<vmem>>, %arg3: memref<8x128xf32, #tpu.memory_space<vmem>>) attributes {dimension_semantics = [#tpu.dimension_semantics<parallel>], iteration_bounds = array<i64: 2>, scalar_prefetch = 0 : i64, scratch_operands = 0 : i64, tpu.core_type = #tpu.core_type<tc>, window_params = [{pipeline_mode = #tpu.pipeline_mode<synchronous>, transform_indices = @transform_0, window_bounds = array<i64: 8, 48>}, {transform_indices = @transform_1, window_bounds = array<i64: 1, 48, 128>}, {transform_indices = @transform_2, window_bounds = array<i64: 8, 128>}]} {
    %c0 = arith.constant 0 : index
    %c0_0 = arith.constant 0 : index
    %0 = vector.load %arg1[%c0, %c0_0] : memref<8x48xbf16, #tpu.memory_space<vmem>>, vector<8x48xbf16>
    %c0_1 = arith.constant 0 : index
    %c0_2 = arith.constant 0 : index
    %c0_3 = arith.constant 0 : index
    %1 = vector.load %arg2[%c0_1, %c0_2, %c0_3] : memref<1x48x128xbf16, #tpu.memory_space<vmem>>, vector<1x48x128xbf16>
    %2 = vector.shape_cast %1 : vector<1x48x128xbf16> to vector<48x128xbf16>
    %cst = arith.constant dense<0.000000e+00> : vector<8x128xf32>
    %3 = tpu.matmul %0, %2, %cst {dimension_numbers = #tpu.dot_dimension_numbers<[1], [0], [0], [1], [0, 0, 1, 1], [], []>} : vector<8x48xbf16>, vector<48x128xbf16>, vector<8x128xf32> -> vector<8x128xf32>
    %c0_4 = arith.constant 0 : index
    %c0_5 = arith.constant 0 : index
    %4 = vector.load %arg3[%c0_4, %c0_5] : memref<8x128xf32, #tpu.memory_space<vmem>>, vector<8x128xf32>
    tpu.vector_store %arg3[%c0_4, %c0_5], %3 {strides = array<i32>} : memref<8x128xf32, #tpu.memory_space<vmem>>, vector<8x128xf32>,
    return
  }
  func.func @transform_0(%arg0: i32) -> (i32, i32) {
    %c0_i32 = arith.constant 0 : i32
    %c0_i32_0 = arith.constant 0 : i32
    %c0_i32_1 = arith.constant 0 : i32
    return %c0_i32, %c0_i32_0 : i32, i32
  }
  func.func @transform_1(%arg0: i32) -> (i32, i32, i32) {
    %c0_i32 = arith.constant 0 : i32
    %c0_i32_0 = arith.constant 0 : i32
    %c0_i32_1 = arith.constant 0 : i32
    return %arg0, %c0_i32, %c0_i32_0 : i32, i32, i32
  }
  func.func @transform_2(%arg0: i32) -> (i32, i32) {
    %c0_i32 = arith.constant 0 : i32
    %c0_i32_0 = arith.constant 0 : i32
    return %c0_i32, %arg0 : i32, i32
  }
}

</mosaic_0001>

<bundles_post_ra>
// kernel: head_forward.1
= control target key start
LH: loop header
LB: loop body
LE: loop exit
PB: predicated region body
PF: predicated region fallthrough
CT: control target
= control target key end

     0   :  { %7 = vsyncpa [#allocation3], 0  ;;  %s570_s0 = inlined_call_operand.vmem [shape: bf16[8,48], index: 0, kind: input, shape index: {}]   ;;  %s571_s1 = inlined_call_operand.hbm [shape: bf16[2,48,128], index: 1, kind: input, shape index: {}]   ;;  %s572_s2 = inlined_call_operand.vmem [shape: f32[8,256], index: 2, kind: output, shape index: {}]  }
   0x1   :  { %9 = vsyncpa [#allocation3 + $0x1], 0  ;;  %s459_s9 = smov 0   ;;  %s461_s10 = smov 0  }
   0x2   :  { %s463_s11 = smov 0   ;;  %s465_s12 = smov 0  }
   0x3 LB: > { %s478_s13 = sadd.s32 4294967295, %s437_s12   ;;  %s481_s14 = sadd.s32 1, %s437_s12   ;;  %s437_s12 = sphi %s465_s12, %s579_s12   ;;  %s433_s11 = sphi %s463_s11, %s578_s11   ;;  %s429_s10 = sphi %s461_s10, %s577_s10   ;;  %s425_s9 = sphi %s459_s9, %s576_s9  }
   0x4   : > { %s40_s15 = ssub.s32 %s437_s12, %s481_s14  ;;  %s43_s16 = sadd.s32 1, %s433_s11 }
   0x5   : > { %p41_p0 = scmp.eq.s32.totalorder %s40_s15, 0  ;;  %p50_p1 = scmp.ne.s32.totalorder %s433_s11, %s429_s10 }
   0x6   : > { %p51_p2 = scmp.eq.s32.totalorder %s437_s12, 0  ;;  %p56_p3 = scmp.ne.s32.totalorder %s429_s10, %s425_s9 }
   0x7   : > { %s491_s17 = scalar_select %p41_p0, %s433_s11, %s43_s16  }
   0x8   : > { %p52_p4 = por %p51_p2, %p50_p1  ;;  %p57_p5 = scmp.eq.s32.totalorder %s478_s13, 0 }
   0x9   : > { %p333_p6 = scmp.lt.s32.totalorder %s437_s12, 2  ;;  %s109_s19 = sand.u32 1, %s433_s11  }
   0xa   : > { %p495_p7 = por %p57_p5, %p56_p3  ;;  %s324_s20 = smul.u32 24, %s109_s19 }
   0xb   : > { %s325_s21 = smul.u32 384, %s437_s12  ;;  %p501_p8 = pnand %p333_p6, %p52_p4 }
   0xc   : > { %s113_s26 = scalar_lea.vmem [#allocation2], %s324_s20  ;;  %s513_s28 = scalar_lea.sflag [#allocation3], %s109_s19 }
   0xd   : > { %s508_s25 = scalar_lea.hbm %s571_s1, %s325_s21  ;;  %s120_s27 = sshll.u32 %s113_s26, 4  ;;  %s510_s27 = int_to_ptr.vmem [resolvable:$true] %s120_s27 }
   0xe   : > { %s373_s29 = scalar_lea.hbm %s508_s25, 384  ;;  %p375_p11 = pneg %p501_p8 }
   0xf   : > { %p374_p10 = scmp.ne.s32.totalorder %s508_s25, %s373_s29  ;;  %s378_s4 = scalar_lea.hbm %s571_s1, 768 }
  0x10   : > { %p379_p0 = scmp.lt.u32.totalorder %s508_s25, %s571_s1  ;;  %p380_p1 = scmp.lt.u32.totalorder %s378_s4, %s373_s29 }
  0x11   : > { %p376_p12 = pnand %p375_p11, %p374_p10  ;;  %p382_p3 = scmp.lt.u32.totalorder %s373_s29, %s508_s25 }
  0x12   : > { %p381_p2 = por %p380_p1, %p379_p0 }
  0x13   : > { %p377_p13 = pneg %p376_p12 }
  0x14   : > { %p383_p4 = por %p382_p3, %p381_p2 }
  0x16   : > { %p384_p5 = pnand %p383_p4, %p377_p13 }
  0x18   : > { %387 = shalt.err (!%p384_p5)
}
  0x19   : > { %s388_s7 = scalar_lea.vmem %s510_s27, 384  ;;  %s439_s8 = smov [#allocation2]  }
  0x1a   : > { %p389_p6 = scmp.ne.s32.totalorder %s510_s27, %s388_s7  ;;  %s393_s9 = sshll.u32 %s439_s8, 4  ;;  %s394_s9 = int_to_ptr.vmem [resolvable:$false] %s393_s9 }
  0x1b   : > { %s395_s15 = scalar_lea.vmem %s394_s9, 768  ;;  %p396_p9 = scmp.lt.s32.totalorder %s510_s27, %s394_s9 }
  0x1c   : > { %p391_p10 = pnand %p389_p6, %p375_p11  ;;  %p397_p0 = scmp.lt.s32.totalorder %s395_s15, %s388_s7 }
  0x1e   : > { %p392_p12 = pneg %p391_p10  ;;  %p398_p1 = por %p397_p0, %p396_p9 }
  0x20   : > { %p399_p2 = pnand %p398_p1, %p392_p12 }
  0x22   : > { %402 = shalt.err (!%p399_p2)
}
  0x23   : > { %s440_s16 = smov 64   ;;  %s441_s19 = smov 4  }
  0x24   : > { %332 = dma.hbm_to_vmem [thread:$0]  (!%p501_p8), %s508_s25, 384, %s510_s27, %s513_s28, %s440_s16, %s440_s16, %s441_s19  }
  0x25   : > { %p128_p11 = scmp.lt.s32.totalorder %s437_s12, 3  ;;  %p575_p13 = scmp.ge.s32.totalorder %s437_s12, 1 }
  0x27   : > { %p129_p3 = pnand %p575_p13, %p128_p11 }
  0x28   : > { %s134_s20 = sand.u32 (!%p129_p3), 1, %s429_s10  }
  0x29   : > { %132 = sbr.rel (%p129_p3) target bundleno = 277 (0x115), region = 28  ;;  %s135_s23 = scalar_lea.sflag (!%p129_p3), [#allocation3], %s134_s20 }
  0x2a   : > { %s326_s21 = smul.u32 (!%p129_p3), 24, %s134_s20 }
  0x2c   : > { %s138_s24 = scalar_lea.vmem (!%p129_p3), [#allocation2], %s326_s21 }
  0x30   : > { %420 = dma.done.wait (%p495_p7), %s135_s23, 384  }
  0x31   : > { %422 = vsyncadd (%p495_p7), %s135_s23, 4294966912  ;;  %v442_v0 = vmov 0.0   ;;  %vm443_vm0 = vmmov 0   ;;  %v370_v1 = vld [vmem:[%s138_s24] sm:$0xff]   ;;  %v371_v2 = vld [vmem:[%s138_s24 + $0x8] sm:$0xff]   ;;  %vm188_vm1 = vcmask 392192  }
  0x32   : > { %314 = vmatprep.subr.bf16.mxu0 %v442_v0  ;;  %320 = vmatprep.mubr.msk.bf16.mxu0 %vm443_vm0, %v442_v0  ;;  %v372_v3 = vld [vmem:[%s138_s24 + $0x10] sm:$0xff]   ;;  %v163_v4 = vld [vmem:[%s570_s0] sm:$0xf]  ;;  %p158_p7 = scmp.lt.s32.totalorder %s478_s13, 1 }
  0x33   : > { %315 = vmatpush3.bf16.msra.mxu0 %v370_v1 }
  0x34   : > { %316 = vmatprep.subr.bf16.mxu0 %v442_v0  ;;  %s581_s13 = smov (!%p158_p7, %s478_s13), 1 }
  0x35   : > { %s303_s18 = sshll.u32 %s581_s13, 3 }
  0x36   : > { %s161_s27 = scalar_lea.vmem %s572_s2, %s303_s18 }
  0x37   : > { %317 = vmatpush3.bf16.msra.mxu0 %v371_v2 }
  0x38   : > { %318 = vmatprep.subr.bf16.mxu0 %v442_v0 }
  0x3b   : > { %319 = vmatpush3.bf16.msra.mxu0 %v372_v3 }
  0x3e   : > { %321 = vmatmul.mubr.msk.bf16.vlgmr.msra.gmra.mrb[0].mxu0 %vm188_vm1, %v163_v4 }
 0x111   : > { %v226_v5 = vpop.f32.mrb[0].mxu0 }
 0x112   : > { %232 = vst [vmem:[%s161_s27] sm:$0xff] %v226_v5  ;;  %v322_v6 = vpop.f32.mrb[1].mxu0 }
 0x113   : > { %v229_v7 = vpop.f32.mrb[2].mxu0 }
 0x114   : > { %v323_v8 = vpop.f32.mrb[3].mxu0 }
 0x115 PF: > { %p12_p8 = scmp.ge.s32.totalorder %s481_s14, 4   ;;  %s576_s9 = smov %s429_s10 }
 0x116   : > { %s577_s10 = smov %s433_s11  ;;  %s578_s11 = smov %s491_s17 }
 0x117   : > { %s579_s12 = smov %s481_s14  ;;  %14 = sbr.rel (!%p12_p8) target bundleno = 3 (0x3), region = 68 }
 0x11e   :  { %252 = vsyncpa [#allocation3], 1 }
 0x11f   :  { %254 = vsyncpa [#allocation3 + $0x1], 1 }

</bundles_post_ra>
